<compile_context>
chip_gen: v7x
topology: tpu7x:2x2x1
jax: 0.10.0
libtpu: 0.0.40
codegen_flags: <defaults>
</compile_context>

<pallas_src>
import jax
import jax.numpy as jnp
from jax.experimental import pallas as pl
from jax.experimental.pallas import tpu as pltpu


def _mlp_kernel(x_ref, w1_ref, b1_ref, w2_ref, b2_ref, o_ref):
    """Linear(4->H) -> ReLU -> Linear(H->3), all on the VPU."""
    x = x_ref[...]           # (B, IN)   f32
    w1 = w1_ref[...]         # (IN, H)   f32
    w2 = w2_ref[...]         # (H, OUT)  f32
    B = x.shape[0]
    in_features, H = w1.shape
    out_dim = w2.shape[1]

    # fc1: bias-initialized accumulator + unrolled rank-1 updates (no MXU --
    # K=4 is far below the systolic tile and the problem is overhead/HBM bound).
    h = jnp.broadcast_to(b1_ref[...], (B, H))
    for k in range(in_features):                 # static unroll, K = 4
        h = h + x[:, k:k + 1] * w1[k:k + 1, :]
    h = jnp.maximum(h, 0.0)                      # ReLU

    # fc2: same rank-1 formulation, K = hidden_units (8).
    y = jnp.broadcast_to(b2_ref[...], (B, out_dim))
    for k in range(H):                           # static unroll, K = 8
        y = y + h[:, k:k + 1] * w2[k:k + 1, :]

    # out_dim = 3 -> masked lane store; accepted (tiny output slab).
    o_ref[...] = y.astype(o_ref.dtype)


# Batch tile for the grid path.  2048 rows keeps per-step pipeline overhead
# (~0.35 us/step) well amortised while the double-buffered tiles stay tiny:
#   x tile 2048*4*4 = 32 KiB, out tile 2048*3*4 = 24 KiB  (<< VMEM on any chip).
_BATCH_TILE = 2048


def iris_forward(x, w1, b1, w2, b2):
    """x: (B, 4) f32; w1: (4, H); b1: (1, H); w2: (H, 3); b2: (1, 3)."""
    x = x.astype(jnp.float32)
    B = x.shape[0]
    out_dim = w2.shape[1]

    if B <= _BATCH_TILE:
        # Overhead-dominated small-batch path: single invocation, no grid.
        vmem = pl.BlockSpec(memory_space=pltpu.MemorySpace.VMEM)
        return pl.pallas_call(
            _mlp_kernel,
            out_shape=jax.ShapeDtypeStruct((B, out_dim), jnp.float32),
            in_specs=[vmem, vmem, vmem, vmem, vmem],
            out_specs=vmem,
        )(x, w1, b1, w2, b2)

    # Large-batch path: tile the batch axis; weights/biases DMA'd once via
    # constant index_maps; batch axis "parallel" (v7x: shard across 2 TCs).
    tb = _BATCH_TILE
    padded = pl.cdiv(B, tb) * tb
    xp = jnp.pad(x, ((0, padded - B), (0, 0))) if padded != B else x

    out = pl.pallas_call(
        _mlp_kernel,
        out_shape=jax.ShapeDtypeStruct((padded, out_dim), jnp.float32),
        grid=(padded // tb,),
        in_specs=[
            pl.BlockSpec((tb, x.shape[1]), lambda i: (i, 0)),
            pl.BlockSpec(w1.shape, lambda i: (0, 0)),
            pl.BlockSpec(b1.shape, lambda i: (0, 0)),
            pl.BlockSpec(w2.shape, lambda i: (0, 0)),
            pl.BlockSpec(b2.shape, lambda i: (0, 0)),
        ],
        out_specs=pl.BlockSpec((tb, out_dim), lambda i: (i, 0)),
        compiler_params=pltpu.CompilerParams(
            dimension_semantics=("parallel",)
        ),
    )(xp, w1, b1, w2, b2)
    return out[:B] if padded != B else out


def init_params(key, in_features=4, hidden_units=8, out_features=3):
    """Deterministic init mimicking nn.Linear's U(-1/sqrt(fan_in), 1/sqrt(fan_in))."""
    k1, k2, k3, k4 = jax.random.split(key, 4)
    bound1 = 1.0 / jnp.sqrt(in_features)
    bound2 = 1.0 / jnp.sqrt(hidden_units)
    # Stored already transposed to (in, out) layout for the kernel (y = x @ W.T + b).
    w1 = jax.random.uniform(k1, (in_features, hidden_units), jnp.float32,
                            minval=-bound1, maxval=bound1)
    b1 = jax.random.uniform(k2, (1, hidden_units), jnp.float32,
                            minval=-bound1, maxval=bound1)
    w2 = jax.random.uniform(k3, (hidden_units, out_features), jnp.float32,
                            minval=-bound2, maxval=bound2)
    b2 = jax.random.uniform(k4, (1, out_features), jnp.float32,
                            minval=-bound2, maxval=bound2)
    return w1, b1, w2, b2


def _reference(x, w1, b1, w2, b2):
    return jnp.maximum(x @ w1 + b1, 0.0) @ w2 + b2


if __name__ == "__main__":
    key = jax.random.PRNGKey(0)
    k_x, k_xl, k_xl2, k_p = jax.random.split(key, 4)

    w1, b1, w2, b2 = init_params(k_p, in_features=4, hidden_units=8, out_features=3)

    # Small-batch path (the Iris use case): B = 8, single no-grid invocation.
    batch = 8
    x = jax.random.normal(k_x, (batch, 4), jnp.float32)
    out = jax.block_until_ready(iris_forward(x, w1, b1, w2, b2))
    assert out.shape == (batch, 3)
    assert jnp.allclose(out, _reference(x, w1, b1, w2, b2), atol=1e-5, rtol=1e-5)

    # Batch-tiled path, divisible batch: exercises the grid/"parallel" variant.
    big = 4096
    xl = jax.random.normal(k_xl, (big, 4), jnp.float32)
    outl = jax.block_until_ready(iris_forward(xl, w1, b1, w2, b2))
    assert outl.shape == (big, 3)
    assert jnp.allclose(outl, _reference(xl, w1, b1, w2, b2), atol=1e-5, rtol=1e-5)

    # Batch-tiled path, ragged batch: exercises pad + slice-back.
    ragged = 5000
    xl2 = jax.random.normal(k_xl2, (ragged, 4), jnp.float32)
    outl2 = jax.block_until_ready(iris_forward(xl2, w1, b1, w2, b2))
    assert outl2.shape == (ragged, 3)
    assert jnp.allclose(outl2, _reference(xl2, w1, b1, w2, b2), atol=1e-5, rtol=1e-5)

    print("KERNEL_OK")
</pallas_src>

<mosaic_0001>
module attributes {stable_mosaic.version = 11 : i64} {
  func.func @_mlp_kernel(%arg0: memref<8x4xf32, #tpu.memory_space<vmem>>, %arg1: memref<4x8xf32, #tpu.memory_space<vmem>>, %arg2: memref<1x8xf32, #tpu.memory_space<vmem>>, %arg3: memref<8x3xf32, #tpu.memory_space<vmem>>, %arg4: memref<1x3xf32, #tpu.memory_space<vmem>>, %arg5: memref<8x3xf32, #tpu.memory_space<vmem>>) attributes {dimension_semantics = [], scalar_prefetch = 0 : i64, scratch_operands = 0 : i64, tpu.core_type = #tpu.core_type<tc>} {
    %c0 = arith.constant 0 : index
    %c0_0 = arith.constant 0 : index
    %0 = vector.load %arg0[%c0, %c0_0] : memref<8x4xf32, #tpu.memory_space<vmem>>, vector<8x4xf32>
    %c0_1 = arith.constant 0 : index
    %c0_2 = arith.constant 0 : index
    %1 = vector.load %arg1[%c0_1, %c0_2] : memref<4x8xf32, #tpu.memory_space<vmem>>, vector<4x8xf32>
    %c0_3 = arith.constant 0 : index
    %c0_4 = arith.constant 0 : index
    %2 = vector.load %arg3[%c0_3, %c0_4] : memref<8x3xf32, #tpu.memory_space<vmem>>, vector<8x3xf32>
    %c0_5 = arith.constant 0 : index
    %c0_6 = arith.constant 0 : index
    %3 = vector.load %arg2[%c0_5, %c0_6] : memref<1x8xf32, #tpu.memory_space<vmem>>, vector<1x8xf32>
    %4 = vector.shape_cast %3 : vector<1x8xf32> to vector<1x8xf32>
    %5 = vector.broadcast %4 : vector<1x8xf32> to vector<8x8xf32>
    %6 = vector.extract_strided_slice %0 {offsets = [0, 0], sizes = [8, 1], strides = [1, 1]} : vector<8x4xf32> to vector<8x1xf32>
    %7 = vector.extract_strided_slice %1 {offsets = [0, 0], sizes = [1, 8], strides = [1, 1]} : vector<4x8xf32> to vector<1x8xf32>
    %8 = vector.broadcast %6 : vector<8x1xf32> to vector<8x8xf32>
    %9 = vector.broadcast %7 : vector<1x8xf32> to vector<8x8xf32>
    %10 = arith.mulf %8, %9 : vector<8x8xf32>
    %11 = arith.addf %5, %10 : vector<8x8xf32>
    %12 = vector.extract_strided_slice %0 {offsets = [0, 1], sizes = [8, 1], strides = [1, 1]} : vector<8x4xf32> to vector<8x1xf32>
    %13 = vector.extract_strided_slice %1 {offsets = [1, 0], sizes = [1, 8], strides = [1, 1]} : vector<4x8xf32> to vector<1x8xf32>
    %14 = vector.broadcast %12 : vector<8x1xf32> to vector<8x8xf32>
    %15 = vector.broadcast %13 : vector<1x8xf32> to vector<8x8xf32>
    %16 = arith.mulf %14, %15 : vector<8x8xf32>
    %17 = arith.addf %11, %16 : vector<8x8xf32>
    %18 = vector.extract_strided_slice %0 {offsets = [0, 2], sizes = [8, 1], strides = [1, 1]} : vector<8x4xf32> to vector<8x1xf32>
    %19 = vector.extract_strided_slice %1 {offsets = [2, 0], sizes = [1, 8], strides = [1, 1]} : vector<4x8xf32> to vector<1x8xf32>
    %20 = vector.broadcast %18 : vector<8x1xf32> to vector<8x8xf32>
    %21 = vector.broadcast %19 : vector<1x8xf32> to vector<8x8xf32>
    %22 = arith.mulf %20, %21 : vector<8x8xf32>
    %23 = arith.addf %17, %22 : vector<8x8xf32>
    %24 = vector.extract_strided_slice %0 {offsets = [0, 3], sizes = [8, 1], strides = [1, 1]} : vector<8x4xf32> to vector<8x1xf32>
    %25 = vector.extract_strided_slice %1 {offsets = [3, 0], sizes = [1, 8], strides = [1, 1]} : vector<4x8xf32> to vector<1x8xf32>
    %26 = vector.broadcast %24 : vector<8x1xf32> to vector<8x8xf32>
    %27 = vector.broadcast %25 : vector<1x8xf32> to vector<8x8xf32>
    %28 = arith.mulf %26, %27 : vector<8x8xf32>
    %29 = arith.addf %23, %28 : vector<8x8xf32>
    %cst = arith.constant 0.000000e+00 : f32
    %30 = vector.broadcast %cst : f32 to vector<8x8xf32>
    %31 = arith.maximumf %29, %30 : vector<8x8xf32>
    %c0_7 = arith.constant 0 : index
    %c0_8 = arith.constant 0 : index
    %32 = vector.load %arg4[%c0_7, %c0_8] : memref<1x3xf32, #tpu.memory_space<vmem>>, vector<1x3xf32>
    %33 = vector.shape_cast %32 : vector<1x3xf32> to vector<1x3xf32>
    %34 = vector.broadcast %33 : vector<1x3xf32> to vector<8x3xf32>
    %35 = vector.extract_strided_slice %31 {offsets = [0, 0], sizes = [8, 1], strides = [1, 1]} : vector<8x8xf32> to vector<8x1xf32>
    %36 = vector.extract_strided_slice %2 {offsets = [0, 0], sizes = [1, 3], strides = [1, 1]} : vector<8x3xf32> to vector<1x3xf32>
    %37 = vector.broadcast %35 : vector<8x1xf32> to vector<8x3xf32>
    %38 = vector.broadcast %36 : vector<1x3xf32> to vector<8x3xf32>
    %39 = arith.mulf %37, %38 : vector<8x3xf32>
    %40 = arith.addf %34, %39 : vector<8x3xf32>
    %41 = vector.extract_strided_slice %31 {offsets = [0, 1], sizes = [8, 1], strides = [1, 1]} : vector<8x8xf32> to vector<8x1xf32>
    %42 = vector.extract_strided_slice %2 {offsets = [1, 0], sizes = [1, 3], strides = [1, 1]} : vector<8x3xf32> to vector<1x3xf32>
    %43 = vector.broadcast %41 : vector<8x1xf32> to vector<8x3xf32>
    %44 = vector.broadcast %42 : vector<1x3xf32> to vector<8x3xf32>
    %45 = arith.mulf %43, %44 : vector<8x3xf32>
    %46 = arith.addf %40, %45 : vector<8x3xf32>
    %47 = vector.extract_strided_slice %31 {offsets = [0, 2], sizes = [8, 1], strides = [1, 1]} : vector<8x8xf32> to vector<8x1xf32>
    %48 = vector.extract_strided_slice %2 {offsets = [2, 0], sizes = [1, 3], strides = [1, 1]} : vector<8x3xf32> to vector<1x3xf32>
    %49 = vector.broadcast %47 : vector<8x1xf32> to vector<8x3xf32>
    %50 = vector.broadcast %48 : vector<1x3xf32> to vector<8x3xf32>
    %51 = arith.mulf %49, %50 : vector<8x3xf32>
    %52 = arith.addf %46, %51 : vector<8x3xf32>
    %53 = vector.extract_strided_slice %31 {offsets = [0, 3], sizes = [8, 1], strides = [1, 1]} : vector<8x8xf32> to vector<8x1xf32>
    %54 = vector.extract_strided_slice %2 {offsets = [3, 0], sizes = [1, 3], strides = [1, 1]} : vector<8x3xf32> to vector<1x3xf32>
    %55 = vector.broadcast %53 : vector<8x1xf32> to vector<8x3xf32>
    %56 = vector.broadcast %54 : vector<1x3xf32> to vector<8x3xf32>
    %57 = arith.mulf %55, %56 : vector<8x3xf32>
    %58 = arith.addf %52, %57 : vector<8x3xf32>
    %59 = vector.extract_strided_slice %31 {offsets = [0, 4], sizes = [8, 1], strides = [1, 1]} : vector<8x8xf32> to vector<8x1xf32>
    %60 = vector.extract_strided_slice %2 {offsets = [4, 0], sizes = [1, 3], strides = [1, 1]} : vector<8x3xf32> to vector<1x3xf32>
    %61 = vector.broadcast %59 : vector<8x1xf32> to vector<8x3xf32>
    %62 = vector.broadcast %60 : vector<1x3xf32> to vector<8x3xf32>
    %63 = arith.mulf %61, %62 : vector<8x3xf32>
    %64 = arith.addf %58, %63 : vector<8x3xf32>
    %65 = vector.extract_strided_slice %31 {offsets = [0, 5], sizes = [8, 1], strides = [1, 1]} : vector<8x8xf32> to vector<8x1xf32>
    %66 = vector.extract_strided_slice %2 {offsets = [5, 0], sizes = [1, 3], strides = [1, 1]} : vector<8x3xf32> to vector<1x3xf32>
    %67 = vector.broadcast %65 : vector<8x1xf32> to vector<8x3xf32>
    %68 = vector.broadcast %66 : vector<1x3xf32> to vector<8x3xf32>
    %69 = arith.mulf %67, %68 : vector<8x3xf32>
    %70 = arith.addf %64, %69 : vector<8x3xf32>
    %71 = vector.extract_strided_slice %31 {offsets = [0, 6], sizes = [8, 1], strides = [1, 1]} : vector<8x8xf32> to vector<8x1xf32>
    %72 = vector.extract_strided_slice %2 {offsets = [6, 0], sizes = [1, 3], strides = [1, 1]} : vector<8x3xf32> to vector<1x3xf32>
    %73 = vector.broadcast %71 : vector<8x1xf32> to vector<8x3xf32>
    %74 = vector.broadcast %72 : vector<1x3xf32> to vector<8x3xf32>
    %75 = arith.mulf %73, %74 : vector<8x3xf32>
    %76 = arith.addf %70, %75 : vector<8x3xf32>
    %77 = vector.extract_strided_slice %31 {offsets = [0, 7], sizes = [8, 1], strides = [1, 1]} : vector<8x8xf32> to vector<8x1xf32>
    %78 = vector.extract_strided_slice %2 {offsets = [7, 0], sizes = [1, 3], strides = [1, 1]} : vector<8x3xf32> to vector<1x3xf32>
    %79 = vector.broadcast %77 : vector<8x1xf32> to vector<8x3xf32>
    %80 = vector.broadcast %78 : vector<1x3xf32> to vector<8x3xf32>
    %81 = arith.mulf %79, %80 : vector<8x3xf32>
    %82 = arith.addf %76, %81 : vector<8x3xf32>
    %c0_9 = arith.constant 0 : index
    %c0_10 = arith.constant 0 : index
    %83 = vector.load %arg5[%c0_9, %c0_10] : memref<8x3xf32, #tpu.memory_space<vmem>>, vector<8x3xf32>
    tpu.vector_store %arg5[%c0_9, %c0_10], %82 {strides = array<i32>} : memref<8x3xf32, #tpu.memory_space<vmem>>, vector<8x3xf32>,
    return
  }
}

</mosaic_0001>

<bundles_post_ra>
// kernel: tpu_custom_call.1
= control target key start
LH: loop header
LB: loop body
LE: loop exit
PB: predicated region body
PF: predicated region fallthrough
CT: control target
= control target key end

     0   :  { %v188_v0 = vmov 0   ;;  %v189_v2 = vmov 2   ;;  %v190_v3 = vmov 1   ;;  %v191_v4 = vmov 3   ;;  %s254_s0 = inlined_call_operand.vmem [shape: f32[8,4], index: 0, kind: input, shape index: {}]   ;;  %s255_s1 = inlined_call_operand.vmem [shape: f32[4,8], index: 1, kind: input, shape index: {}]   ;;  %s256_s2 = inlined_call_operand.vmem [shape: f32[1,8], index: 2, kind: input, shape index: {}]   ;;  %s257_s3 = inlined_call_operand.vmem [shape: f32[8,3], index: 3, kind: input, shape index: {}]   ;;  %s258_s4 = inlined_call_operand.vmem [shape: f32[1,3], index: 4, kind: input, shape index: {}]   ;;  %s259_s5 = inlined_call_operand.vmem [shape: f32[8,3], index: 5, kind: output, shape index: {}]  }
   0x1   :  { %176 = vset.pattern.permute.xlu0 %v188_v0  ;;  %v20_v1 = vld [vmem:[%s254_s0] sm:$0xff]  ;;  %178 = vset.pattern.permute.xlu1 %v189_v2  ;;  %v35_v5 = vlaneseq  ;;  %v192_v30 = vmov 6   ;;  %v193_v31 = vmov 4   ;;  %v194_v32 = vmov 5  }
   0x2   :  { %32 = vperm.xlu0 %176, %v20_v1   ;;  %52 = vperm.xlu1 %178, %v20_v1   ;;  %v21_v8 = vld [vmem:[%s255_s1] sm:$0xf]  ;;  %v195_v33 = vmov 7   ;;  %vm160_vm0 = vcmask 23552  }
   0x3   :  { %v229_v6 = vshrl.u32 %v35_v5, 7  ;;  %v166_v17 = vld [vmem:[%s256_s2] ss:$0 sm:$0xff] }
   0x4   :  { %v22_v34 = vld [vmem:[%s257_s3] sm:$0xff] }
   0x5   :  { %v37_v7 = vsub.s32 0, %v229_v6  ;;  %v47_v10 = vsub.s32 1, %v229_v6  ;;  %v57_v12 = vsub.s32 2, %v229_v6  ;;  %v67_v14 = vsub.s32 3, %v229_v6  ;;  %v167_v38 = vld [vmem:[%s258_s4] ss:$0 sm:$0xff] }
   0x6   :  { %177 = vset.pattern.permute.xlu0 %v190_v3  ;;  %179 = vset.pattern.permute.xlu1 %v191_v4  ;;  %v126_v44 = vsub.s32 4, %v229_v6  ;;  %v136_v52 = vsub.s32 5, %v229_v6  ;;  %v146_v54 = vsub.s32 6, %v229_v6  ;;  %v156_v59 = vsub.s32 7, %v229_v6 }
   0x7   :  { %42 = vperm.xlu0 %177, %v20_v1   ;;  %62 = vperm.xlu1 %179, %v20_v1   ;;  %v38_v9 = vrot.slane %v21_v8, %v37_v7  ;;  %v48_v16 = vrot.slane %v21_v8, %v47_v10  ;;  %v58_v18 = vrot.slane %v21_v8, %v57_v12 }
   0x8   :  { %v68_v19 = vrot.slane %v21_v8, %v67_v14  ;;  %v87_v35 = vrot.slane %v22_v34, %v37_v7  ;;  %v97_v36 = vrot.slane %v22_v34, %v47_v10  ;;  %v107_v41 = vrot.slane %v22_v34, %v57_v12 }
   0x9   :  { %v117_v47 = vrot.slane %v22_v34, %v67_v14  ;;  %v127_v51 = vrot.slane %v22_v34, %v126_v44  ;;  %v137_v58 = vrot.slane %v22_v34, %v136_v52  ;;  %v147_v60 = vrot.slane %v22_v34, %v146_v54 }
   0xa   :  { %v157_v1 = vrot.slane %v22_v34, %v156_v59 }
   0xb   :  { %180 = vset.pattern.permute.xlu1 %v188_v0 }
  0x81   :  { %v33_v11 = vpop.permute.xlu0 %32  ;;  %v53_v13 = vpop.permute.xlu1 %52 }
  0x82   :  { %v39_v15 = vmul.f32 %v38_v9, %v33_v11  ;;  %v59_v24 = vmul.f32 %v58_v18, %v53_v13 }
  0x84   :  { %v40_v22 = vadd.f32 %v166_v17, %v39_v15 }
  0x86   :  { %v43_v20 = vpop.permute.xlu0 %42  ;;  %v63_v21 = vpop.permute.xlu1 %62 }
  0x87   :  { %v49_v23 = vmul.f32 %v48_v16, %v43_v20  ;;  %v69_v26 = vmul.f32 %v68_v19, %v63_v21 }
  0x89   :  { %v50_v25 = vadd.f32 %v49_v23, %v40_v22 }
  0x8b   :  { %v60_v27 = vadd.f32 %v59_v24, %v50_v25 }
  0x8d   :  { %v70_v28 = vadd.f32 %v69_v26, %v60_v27 }
  0x8f   :  { %v71_v29 = vmax.f32 %v70_v28, 0.0 }
  0x91   :  { %91 = vperm.xlu0 %177, %v71_v29   ;;  %81 = vperm.xlu1 %180, %v71_v29  }
  0x95   :  { %182 = vset.pattern.permute.xlu0 %v191_v4  ;;  %181 = vset.pattern.permute.xlu1 %v189_v2 }
  0x96   :  { %111 = vperm.xlu0 %182, %v71_v29   ;;  %101 = vperm.xlu1 %181, %v71_v29  }
  0x9a   :  { %185 = vset.pattern.permute.xlu0 %v192_v30  ;;  %183 = vset.pattern.permute.xlu1 %v193_v31 }
  0x9b   :  { %141 = vperm.xlu0 %185, %v71_v29   ;;  %121 = vperm.xlu1 %183, %v71_v29  }
  0x9f   :  { %184 = vset.pattern.permute.xlu1 %v194_v32  ;;  %187 = vset.pattern.permute.xlu0 %v195_v33 }
  0xa0   :  { %131 = vperm.xlu1 %184, %v71_v29  }
  0xa4   :  { %186 = vset.pattern.permute.xlu1 %v195_v33 }
  0xa5   :  { %151 = vperm.xlu1 %186, %v71_v29  }
 0x110   :  { %v92_v37 = vpop.permute.xlu0 %91  ;;  %v82_v39 = vpop.permute.xlu1 %81 }
 0x111   :  { %v88_v40 = vmul.f32 %v87_v35, %v82_v39  ;;  %v98_v42 = vmul.f32 %v97_v36, %v92_v37 }
 0x113   :  { %v89_v43 = vadd.f32 %v167_v38, %v88_v40 }
 0x115   :  { %v99_v45 = vadd.f32 %v98_v42, %v89_v43  ;;  %v102_v46 = vpop.permute.xlu1 %101  ;;  %v112_v49 = vpop.permute.xlu0 %111 }
 0x116   :  { %v108_v48 = vmul.f32 %v107_v41, %v102_v46  ;;  %v118_v53 = vmul.f32 %v117_v47, %v112_v49 }
 0x118   :  { %v109_v50 = vadd.f32 %v108_v48, %v99_v45 }
 0x11a   :  { %v122_v55 = vpop.permute.xlu1 %121  ;;  %v119_v56 = vadd.f32 %v118_v53, %v109_v50  ;;  %v142_v61 = vpop.permute.xlu0 %141 }
 0x11b   :  { %v128_v57 = vmul.f32 %v127_v51, %v122_v55  ;;  %v148_v2 = vmul.f32 %v147_v60, %v142_v61 }
 0x11d   :  { %v129_v63 = vadd.f32 %v128_v57, %v119_v56 }
 0x11f   :  { %v132_v62 = vpop.permute.xlu1 %131 }
 0x120   :  { %v138_v0 = vmul.f32 %v137_v58, %v132_v62 }
 0x122   :  { %v139_v3 = vadd.f32 %v138_v0, %v129_v63 }
 0x124   :  { %v149_v4 = vadd.f32 %v148_v2, %v139_v3  ;;  %v152_v5 = vpop.permute.xlu1 %151 }
 0x125   :  { %v158_v7 = vmul.f32 %v157_v1, %v152_v5 }
 0x127   :  { %v159_v8 = vadd.f32 %v158_v7, %v149_v4 }
 0x129   :  { %161 = vst.msk [vmem:[%s259_s5] sm:$0xff] %vm160_vm0, %v159_v8 }

</bundles_post_ra>
